<compile_context>
chip_gen: v5e
topology: v5e:2x2
jax: 0.10.0
libtpu: 0.0.40
codegen_flags: <defaults>
</compile_context>

<pallas_src>
import math

import jax
import jax.numpy as jnp
from jax.experimental import pallas as pl
from jax.experimental.pallas import tpu as pltpu


def _round_up(x, m):
    return ((x + m - 1) // m) * m


# ----------------------------------------------------------------------------
# Pallas kernel: fused 3-layer MLP, transposed layout (features x rows)
#   softplus(W3 @ relu(W2 @ relu(W1 @ x^T + b1) + b2) + b3)
# ----------------------------------------------------------------------------
def _mlp_softplus_kernel(x_ref, w1_ref, b1_ref, w2_ref, b2_ref,
                         w3_ref, b3_ref, out_ref):
    mm_dtype = w1_ref.dtype            # f32 by default; optionally bf16 streaming

    h = jnp.dot(w1_ref[...], x_ref[...], preferred_element_type=jnp.float32)
    h = jnp.maximum(h + b1_ref[...], 0.0).astype(mm_dtype)      # (h_dim, TILE_N)

    h = jnp.dot(w2_ref[...], h, preferred_element_type=jnp.float32)
    h = jnp.maximum(h + b2_ref[...], 0.0).astype(mm_dtype)      # (h_dim, TILE_N)

    z = jnp.dot(w3_ref[...], h, preferred_element_type=jnp.float32)
    z = z + b3_ref[...]                                         # (out_dim, TILE_N)

    # Numerically stable Softplus in f32: max(z, 0) + log1p(exp(-|z|)).
    sp = jnp.maximum(z, 0.0) + jnp.log1p(jnp.exp(-jnp.abs(z)))
    out_ref[...] = sp.astype(out_ref.dtype)


# ----------------------------------------------------------------------------
# Primary (lane-dense) API: x_t is (in_dim, N); returns alphas_t (out_dim, N).
# No transposes, no padding unless N % 128 != 0.
# ----------------------------------------------------------------------------
def dirichlet_alphas_t(x_t, params, *, target_tile_n=8192, min_grid_steps=2,
                       matmul_dtype=None):
    w1, b1, w2, b2, w3, b3 = params    # torch layout: W (fan_out, fan_in), b (fan_out, 1)
    in_dim, n = x_t.shape
    h_dim = w1.shape[0]
    out_dim = w3.shape[0]

    # Pad the lane dim only to a multiple of 128 (no-op when already aligned).
    n_pad = _round_up(n, 128)
    if n_pad != n:
        x_t = jnp.pad(x_t, ((0, 0), (0, n_pad - n)))

    # Tile selection: as big as possible (amortize per-step overhead), always a
    # multiple of 128, and keep >= min_grid_steps steps so v7x can shard the
    # "parallel" axis across its 2 TensorCores.
    tile_n = max(128, (min(int(target_tile_n), n_pad) // 128) * 128)
    if min_grid_steps > 1:
        tile_n = min(tile_n, max(128, ((n_pad // min_grid_steps) // 128) * 128))
    grid = (pl.cdiv(n_pad, tile_n),)

    # Optional bf16 streaming (v6e/v7x): cast x tile + weights; biases stay f32.
    if matmul_dtype is not None:
        x_t = x_t.astype(matmul_dtype)
        w1c, w2c, w3c = (w.astype(matmul_dtype) for w in (w1, w2, w3))
    else:
        w1c, w2c, w3c = w1, w2, w3

    const = lambda i: (0, 0)           # resident operands (never change block)

    itemsize = jnp.dtype(matmul_dtype or jnp.float32).itemsize
    flops = 2 * n_pad * (in_dim * h_dim + h_dim * h_dim + h_dim * out_dim)
    transcendentals = 2 * n_pad * out_dim              # exp + log1p per output
    bytes_accessed = (itemsize * (n_pad * in_dim
                                  + in_dim * h_dim + h_dim * h_dim + h_dim * out_dim)
                      + 4 * (n_pad * out_dim + 2 * h_dim + out_dim))

    out_t = pl.pallas_call(
        _mlp_softplus_kernel,
        out_shape=jax.ShapeDtypeStruct((out_dim, n_pad), jnp.float32),
        grid=grid,
        in_specs=[
            pl.BlockSpec((in_dim, tile_n), lambda i: (0, i)),   # x^T   (streamed)
            pl.BlockSpec((h_dim, in_dim), const),               # W1    (resident)
            pl.BlockSpec((h_dim, 1), const),                    # b1
            pl.BlockSpec((h_dim, h_dim), const),                # W2
            pl.BlockSpec((h_dim, 1), const),                    # b2
            pl.BlockSpec((out_dim, h_dim), const),              # W3
            pl.BlockSpec((out_dim, 1), const),                  # b3
        ],
        out_specs=pl.BlockSpec((out_dim, tile_n), lambda i: (0, i)),
        compiler_params=pltpu.CompilerParams(
            dimension_semantics=("parallel",),   # v7x: shard row tiles over 2 TCs
        ),
        cost_estimate=pl.CostEstimate(
            flops=int(flops),
            transcendentals=int(transcendentals),
            bytes_accessed=int(bytes_accessed),
        ),
    )(x_t, w1c, b1, w2c, b2, w3c, b3)

    return out_t if n_pad == n else out_t[:, :n]


# ----------------------------------------------------------------------------
# Convenience row-major API (matches torch's (N, in_dim) -> (N, out_dim)).
# NOTE: the transposes here are extra XLA relayout passes; perf-critical
# callers should use dirichlet_alphas_t and keep the (feat, N) layout.
# ----------------------------------------------------------------------------
def vb_dirichlet_nn_forward(x2d, params, **kwargs):
    return dirichlet_alphas_t(x2d.T, params, **kwargs).T


# ----------------------------------------------------------------------------
# Deterministic parameter construction (mirrors nn.Linear default init ranges);
# torch-native layout: W (fan_out, fan_in), b stored as a (fan_out, 1) column.
# ----------------------------------------------------------------------------
def init_linear(key, fan_in, fan_out):
    kw, kb = jax.random.split(key)
    bound = 1.0 / math.sqrt(fan_in)
    w = jax.random.uniform(kw, (fan_out, fan_in), jnp.float32, -bound, bound)
    b = jax.random.uniform(kb, (fan_out, 1), jnp.float32, -bound, bound)
    return w, b


def build_params(key, in_dim, h_dim, out_dim):
    k1, k2, k3 = jax.random.split(key, 3)
    w1, b1 = init_linear(k1, in_dim, h_dim)
    w2, b2 = init_linear(k2, h_dim, h_dim)
    w3, b3 = init_linear(k3, h_dim, out_dim)
    return (w1, b1, w2, b2, w3, b3)


def reference_forward(x2d, params):
    """Pure-JAX reference in row-major layout at HIGHEST precision."""
    w1, b1, w2, b2, w3, b3 = params
    hi = jax.lax.Precision.HIGHEST
    h = jnp.maximum(jnp.dot(x2d, w1.T, precision=hi) + b1[:, 0], 0.0)
    h = jnp.maximum(jnp.dot(h, w2.T, precision=hi) + b2[:, 0], 0.0)
    z = jnp.dot(h, w3.T, precision=hi) + b3[:, 0]
    return jnp.maximum(z, 0.0) + jnp.log1p(jnp.exp(-jnp.abs(z)))


# ----------------------------------------------------------------------------
# Main
# ----------------------------------------------------------------------------
if __name__ == "__main__":
    # Module config: N Dirichlet "sites" x DNA-alphabet-sized feature dim of 4.
    n_sites = 1024
    in_dim = 4
    out_dim = 4
    h_dim = 16          # module default h_dim

    key = jax.random.PRNGKey(0)
    k_params, k_check = jax.random.split(key)
    params = build_params(k_params, in_dim, h_dim, out_dim)

    # self.input = init_parameters([0.1, 0.1], nb_params, in_shape[:-1])
    #   -> tensor of shape [n_sites, in_dim] filled with 0.1.  We construct it
    #   directly in the transposed lane-dense (in_dim, N) layout (free for a
    #   constant fill) so no relayout pass is needed before or after the kernel.
    x_t = jnp.full((in_dim, n_sites), 0.1, dtype=jnp.float32)

    # forward(): alphas = net(input); dist = Dirichlet(alphas)
    alphas_t = jax.block_until_ready(dirichlet_alphas_t(x_t, params))
    assert alphas_t.shape == (out_dim, n_sites)
    assert bool(jnp.all(alphas_t > 0.0))               # valid Dirichlet concentrations

    ref = reference_forward(x_t.T, params)             # (N, out_dim), HIGHEST precision
    # Tolerance covers possible MXU default-precision differences vs HIGHEST.
    assert bool(jnp.max(jnp.abs(alphas_t.T - ref)) < 5e-2)

    # Row-major convenience API + padding path (N not a multiple of 128) with
    # non-constant inputs (distinct rows).
    x_rand = jax.random.normal(k_check, (1000, in_dim), jnp.float32)
    a_rand = jax.block_until_ready(vb_dirichlet_nn_forward(x_rand, params))
    r_rand = reference_forward(x_rand, params)
    assert a_rand.shape == (1000, out_dim)
    assert bool(jnp.all(a_rand > 0.0))
    assert bool(jnp.max(jnp.abs(a_rand - r_rand)) < 5e-2)

    # Optional bf16-streaming path (v6e/v7x byte-halving); sanity check only.
    a_bf16_t = jax.block_until_ready(
        dirichlet_alphas_t(x_t, params, matmul_dtype=jnp.bfloat16))
    assert bool(jnp.all(a_bf16_t > 0.0))
    assert bool(jnp.max(jnp.abs(a_bf16_t - alphas_t)) < 2e-1)

    print("KERNEL_OK")
</pallas_src>

<mosaic_0001>
module attributes {stable_mosaic.version = 11 : i64} {
  func.func @_mlp_softplus_kernel(%arg0: i32, %arg1: memref<4x512xf32, #tpu.memory_space<vmem>>, %arg2: memref<16x4xf32, #tpu.memory_space<vmem>>, %arg3: memref<16x1xf32, #tpu.memory_space<vmem>>, %arg4: memref<16x16xf32, #tpu.memory_space<vmem>>, %arg5: memref<16x1xf32, #tpu.memory_space<vmem>>, %arg6: memref<4x16xf32, #tpu.memory_space<vmem>>, %arg7: memref<4x1xf32, #tpu.memory_space<vmem>>, %arg8: memref<4x512xf32, #tpu.memory_space<vmem>>) attributes {dimension_semantics = [#tpu.dimension_semantics<parallel>], iteration_bounds = array<i64: 2>, scalar_prefetch = 0 : i64, scratch_operands = 0 : i64, tpu.core_type = #tpu.core_type<tc>, window_params = [{transform_indices = @transform_0, window_bounds = array<i64: 4, 512>}, {pipeline_mode = #tpu.pipeline_mode<synchronous>, transform_indices = @transform_1, window_bounds = array<i64: 16, 4>}, {pipeline_mode = #tpu.pipeline_mode<synchronous>, transform_indices = @transform_2, window_bounds = array<i64: 16, 1>}, {pipeline_mode = #tpu.pipeline_mode<synchronous>, transform_indices = @transform_3, window_bounds = array<i64: 16, 16>}, {pipeline_mode = #tpu.pipeline_mode<synchronous>, transform_indices = @transform_4, window_bounds = array<i64: 16, 1>}, {pipeline_mode = #tpu.pipeline_mode<synchronous>, transform_indices = @transform_5, window_bounds = array<i64: 4, 16>}, {pipeline_mode = #tpu.pipeline_mode<synchronous>, transform_indices = @transform_6, window_bounds = array<i64: 4, 1>}, {transform_indices = @transform_7, window_bounds = array<i64: 4, 512>}]} {
    %c0 = arith.constant 0 : index
    %c0_0 = arith.constant 0 : index
    %0 = vector.load %arg2[%c0, %c0_0] : memref<16x4xf32, #tpu.memory_space<vmem>>, vector<16x4xf32>
    %c0_1 = arith.constant 0 : index
    %c0_2 = arith.constant 0 : index
    %1 = vector.load %arg1[%c0_1, %c0_2] : memref<4x512xf32, #tpu.memory_space<vmem>>, vector<4x512xf32>
    %cst = arith.constant dense<0.000000e+00> : vector<16x512xf32>
    %2 = tpu.matmul %0, %1, %cst {dimension_numbers = #tpu.dot_dimension_numbers<[1], [0], [0], [1], [0, 0, 1, 1], [], []>} : vector<16x4xf32>, vector<4x512xf32>, vector<16x512xf32> -> vector<16x512xf32>
    %c0_3 = arith.constant 0 : index
    %c0_4 = arith.constant 0 : index
    %3 = vector.load %arg3[%c0_3, %c0_4] : memref<16x1xf32, #tpu.memory_space<vmem>>, vector<16x1xf32>
    %4 = vector.broadcast %3 : vector<16x1xf32> to vector<16x512xf32>
    %5 = arith.addf %2, %4 : vector<16x512xf32>
    %cst_5 = arith.constant 0.000000e+00 : f32
    %6 = vector.broadcast %cst_5 : f32 to vector<16x512xf32>
    %7 = arith.maximumf %5, %6 : vector<16x512xf32>
    %c0_6 = arith.constant 0 : index
    %c0_7 = arith.constant 0 : index
    %8 = vector.load %arg4[%c0_6, %c0_7] : memref<16x16xf32, #tpu.memory_space<vmem>>, vector<16x16xf32>
    %cst_8 = arith.constant dense<0.000000e+00> : vector<16x512xf32>
    %9 = tpu.matmul %8, %7, %cst_8 {dimension_numbers = #tpu.dot_dimension_numbers<[1], [0], [0], [1], [0, 0, 1, 1], [], []>} : vector<16x16xf32>, vector<16x512xf32>, vector<16x512xf32> -> vector<16x512xf32>
    %c0_9 = arith.constant 0 : index
    %c0_10 = arith.constant 0 : index
    %10 = vector.load %arg5[%c0_9, %c0_10] : memref<16x1xf32, #tpu.memory_space<vmem>>, vector<16x1xf32>
    %11 = vector.broadcast %10 : vector<16x1xf32> to vector<16x512xf32>
    %12 = arith.addf %9, %11 : vector<16x512xf32>
    %cst_11 = arith.constant 0.000000e+00 : f32
    %13 = vector.broadcast %cst_11 : f32 to vector<16x512xf32>
    %14 = arith.maximumf %12, %13 : vector<16x512xf32>
    %c0_12 = arith.constant 0 : index
    %c0_13 = arith.constant 0 : index
    %15 = vector.load %arg6[%c0_12, %c0_13] : memref<4x16xf32, #tpu.memory_space<vmem>>, vector<4x16xf32>
    %cst_14 = arith.constant dense<0.000000e+00> : vector<4x512xf32>
    %16 = tpu.matmul %15, %14, %cst_14 {dimension_numbers = #tpu.dot_dimension_numbers<[1], [0], [0], [1], [0, 0, 1, 1], [], []>} : vector<4x16xf32>, vector<16x512xf32>, vector<4x512xf32> -> vector<4x512xf32>
    %c0_15 = arith.constant 0 : index
    %c0_16 = arith.constant 0 : index
    %17 = vector.load %arg7[%c0_15, %c0_16] : memref<4x1xf32, #tpu.memory_space<vmem>>, vector<4x1xf32>
    %18 = vector.broadcast %17 : vector<4x1xf32> to vector<4x512xf32>
    %19 = arith.addf %16, %18 : vector<4x512xf32>
    %cst_17 = arith.constant 0.000000e+00 : f32
    %20 = vector.broadcast %cst_17 : f32 to vector<4x512xf32>
    %21 = arith.maximumf %19, %20 : vector<4x512xf32>
    %22 = math.absf %19 : vector<4x512xf32>
    %cst_18 = arith.constant 0.000000e+00 : f32
    %23 = vector.broadcast %cst_18 : f32 to vector<4x512xf32>
    %24 = arith.subf %23, %22 : vector<4x512xf32>
    %25 = math.exp %24 : vector<4x512xf32>
    %26 = math.log1p %25 : vector<4x512xf32>
    %27 = arith.addf %21, %26 : vector<4x512xf32>
    %c0_19 = arith.constant 0 : index
    %c0_20 = arith.constant 0 : index
    %28 = vector.load %arg8[%c0_19, %c0_20] : memref<4x512xf32, #tpu.memory_space<vmem>>, vector<4x512xf32>
    tpu.vector_store %arg8[%c0_19, %c0_20], %27 {strides = array<i32>} : memref<4x512xf32, #tpu.memory_space<vmem>>, vector<4x512xf32>,
    return
  }
  func.func @transform_0(%arg0: i32) -> (i32, i32) {
    %c0_i32 = arith.constant 0 : i32
    %c0_i32_0 = arith.constant 0 : i32
    return %c0_i32, %arg0 : i32, i32
  }
  func.func @transform_1(%arg0: i32) -> (i32, i32) {
    %c0_i32 = arith.constant 0 : i32
    %c0_i32_0 = arith.constant 0 : i32
    %c0_i32_1 = arith.constant 0 : i32
    return %c0_i32, %c0_i32_0 : i32, i32
  }
  func.func @transform_2(%arg0: i32) -> (i32, i32) {
    %c0_i32 = arith.constant 0 : i32
    %c0_i32_0 = arith.constant 0 : i32
    %c0_i32_1 = arith.constant 0 : i32
    return %c0_i32, %c0_i32_0 : i32, i32
  }
  func.func @transform_3(%arg0: i32) -> (i32, i32) {
    %c0_i32 = arith.constant 0 : i32
    %c0_i32_0 = arith.constant 0 : i32
    %c0_i32_1 = arith.constant 0 : i32
    return %c0_i32, %c0_i32_0 : i32, i32
  }
  func.func @transform_4(%arg0: i32) -> (i32, i32) {
    %c0_i32 = arith.constant 0 : i32
    %c0_i32_0 = arith.constant 0 : i32
    %c0_i32_1 = arith.constant 0 : i32
    return %c0_i32, %c0_i32_0 : i32, i32
  }
  func.func @transform_5(%arg0: i32) -> (i32, i32) {
    %c0_i32 = arith.constant 0 : i32
    %c0_i32_0 = arith.constant 0 : i32
    %c0_i32_1 = arith.constant 0 : i32
    return %c0_i32, %c0_i32_0 : i32, i32
  }
  func.func @transform_6(%arg0: i32) -> (i32, i32) {
    %c0_i32 = arith.constant 0 : i32
    %c0_i32_0 = arith.constant 0 : i32
    %c0_i32_1 = arith.constant 0 : i32
    return %c0_i32, %c0_i32_0 : i32, i32
  }
  func.func @transform_7(%arg0: i32) -> (i32, i32) {
    %c0_i32 = arith.constant 0 : i32
    %c0_i32_0 = arith.constant 0 : i32
    return %c0_i32, %arg0 : i32, i32
  }
}

</mosaic_0001>

<bundles_post_ra>
// kernel: tpu_custom_call.1
= control target key start
LH: loop header
LB: loop body
LE: loop exit
PB: predicated region body
PF: predicated region fallthrough
CT: control target
= control target key end

     0   :  { %12 = vsyncpa [#allocation3], 0  ;;  %s1130_s0 = inlined_call_operand.vmem [shape: f32[4,1024], index: 0, kind: input, shape index: {}]   ;;  %s1131_s1 = inlined_call_operand.vmem [shape: f32[16,4], index: 1, kind: input, shape index: {}]   ;;  %s1132_s2 = inlined_call_operand.vmem [shape: f32[16,1], index: 2, kind: input, shape index: {}]   ;;  %s1133_s3 = inlined_call_operand.vmem [shape: f32[16,16], index: 3, kind: input, shape index: {}]   ;;  %s1134_s4 = inlined_call_operand.vmem [shape: f32[16,1], index: 4, kind: input, shape index: {}]   ;;  %s1135_s5 = inlined_call_operand.vmem [shape: f32[4,16], index: 5, kind: input, shape index: {}]   ;;  %s1136_s6 = inlined_call_operand.vmem [shape: f32[4,1], index: 6, kind: input, shape index: {}]   ;;  %s1137_s7 = inlined_call_operand.hbm [shape: f32[4,1024], index: 7, kind: output, shape index: {}]  }
   0x1   :  { %14 = vsyncpa [#allocation3 + $0x1], 0  ;;  %s981_s24 = smov 0   ;;  %s983_s25 = smov 0  }
   0x2   :  { %s985_s26 = smov 0   ;;  %s987_s27 = smov 0  }
   0x3 LB: > { %s1002_s28 = sadd.s32 4294967295, %s938_s27   ;;  %s780_s29 = sadd.s32 4294967294, %s938_s27   ;;  %s938_s27 = sphi %s987_s27, %s1143_s27   ;;  %s934_s26 = sphi %s985_s26, %s1142_s26   ;;  %s930_s25 = sphi %s983_s25, %s1141_s25   ;;  %s926_s24 = sphi %s981_s24, %s1140_s24  }
   0x4   : > { %s1006_s30 = sadd.s32 1, %s938_s27   ;;  %s179_s8 = sadd.s32 1, %s934_s26 }
   0x5   : > { %s176_s9 = ssub.s32 %s938_s27, %s1006_s30  ;;  %p189_p0 = scmp.ne.s32.totalorder %s934_s26, %s930_s25 }
   0x6   : > { %p177_p1 = scmp.eq.s32.totalorder %s176_s9, 0  ;;  %p190_p2 = scmp.eq.s32.totalorder %s1002_s28, 1 }
   0x7   : > { %p195_p3 = scmp.ne.s32.totalorder %s930_s25, %s926_s24  ;;  %p196_p4 = scmp.eq.s32.totalorder %s780_s29, 1 }
   0x8   : > { %s1017_s10 = scalar_select %p177_p1, %s934_s26, %s179_s8  }
   0x9   : > { %p1019_p5 = por %p190_p2, %p189_p0  ;;  %p1023_p6 = por %p196_p4, %p195_p3 }
   0xa   : > { %p783_p7 = scmp.ge.s32.totalorder %s938_s27, 1  ;;  %p241_p8 = scmp.lt.s32.totalorder %s938_s27, 3 }
   0xc   : > { %p242_p9 = pnand %p783_p7, %p241_p8 }
   0xd   : > { %s785_s13 = sshll.u32 (!%p242_p9), %s1002_s28, 2  ;;  %s270_s29 = sand.u32 (!%p242_p9), 1, %s930_s25  }
   0xe   : > { %245 = sbr.rel (%p242_p9) target bundleno = 496 (0x1f0), region = 48  ;;  %p274_p10 = scmp.lt.s32.totalorder (!%p242_p9), %s785_s13, 7 }
   0xf   : > { %s784_s8 = sshll.u32 (!%p242_p9), %s270_s29, 4  ;;  %s705_s18 = scalar_lea.sflag (!%p242_p9), [#allocation3], %s270_s29 }
  0x10   : > { %s1091_s9 = scalar_lea.vmem (!%p242_p9), [#allocation2], %s784_s8  ;;  %s896_s23 = scalar_lea.hbm (!%p242_p9), %s1137_s7, 32 }
  0x13   : > { %v940_v0 = vmov 0   ;;  %v285_v1 = vld [vmem:[%s1132_s2 + $0x8] sm:$0xff]  ;;  %s1145_s13 = smov (!%p274_p10, %s785_s13), 7  ;;  %v284_v4 = vld [vmem:[%s1132_s2] sm:$0xff]  ;;  %vm312_vm0 = vcmask 1043456   ;;  %vm305_vm1 = vcmask 31744  }
  0x14   : > { %857 = vset.pattern.permute.xlu0 %v940_v0  ;;  %858 = vset.pattern.permute.xlu1 %v940_v0  ;;  %s786_s16 = sshll.u32 %s1145_s13, 2  ;;  %v280_v5 = vld [vmem:[%s1131_s1] sm:$0xff]  ;;  %v281_v10 = vld [vmem:[%s1131_s1 + $0x8] sm:$0xff]  ;;  %vm435_vm2 = vcmask 130048   ;;  %s816_s13 = sshll.u32 %s1002_s28, 4 }
  0x15   : > { %293 = vperm.xlu0 %857, %v285_v1   ;;  %859 = vset.pattern.permute.xlu2 %v940_v0  ;;  %s277_s19 = scalar_lea.vmem %s1130_s0, %s786_s16  ;;  %v424_v12 = vld [vmem:[%s1134_s4 + $0x8] sm:$0xff]  ;;  %v423_v15 = vld [vmem:[%s1134_s4] sm:$0xff]  ;;  %s716_s16 = scalar_lea.hbm %s1137_s7, %s816_s13 }
  0x16   : > { %v282_v2 = vld [vmem:[%s277_s19] sm:$0xff]  ;;  %v283_v3 = vld [vmem:[%s277_s19 + $0x8] sm:$0xff]  ;;  %432 = vperm.xlu1 %858, %v424_v12   ;;  %s718_s28 = sshll.u32 %s1091_s9, 4  ;;  %s720_s17 = sshll.u32 %s716_s16, 4  ;;  %s719_s28 = int_to_ptr.vmem [resolvable:$true] %s718_s28  ;;  %s721_s17 = int_to_ptr.hbm [resolvable:$true] %s720_s17 }
  0x17   : > { %298 = vst [vmem:[#allocation1] ss:$2 sm:$0xff] %v282_v2  ;;  %v421_v29 = vld [vmem:[%s1133_s3] sm:$0xff]  ;;  %v422_v40 = vld [vmem:[%s1133_s3 + $0x8] sm:$0xff]  ;;  %s890_s19 = sshra.s32 %s721_s17, 4  ;;  %s891_s19 = int_to_ptr.hbm [resolvable:$true] %s890_s19 }
  0x18   : > { %300 = vst [vmem:[#allocation1 + $0x10] ss:$2 sm:$0xff] %v283_v3  ;;  %v543_v42 = vld [vmem:[%s1136_s6] sm:$0xf]  ;;  %s892_s20 = scalar_lea.hbm %s891_s19, 16  ;;  %p897_p0 = scmp.lt.s32.totalorder %s891_s19, %s1137_s7 }
  0x19   : > { %546 = vperm.xlu2 %859, %v543_v42   ;;  %v542_v58 = vld [vmem:[%s1135_s5] sm:$0xf]  ;;  %p893_p11 = scmp.ne.s32.totalorder %s891_s19, %s892_s20  ;;  %p898_p1 = scmp.lt.s32.totalorder %s896_s23, %s892_s20 }
  0x1b   : > { %p894_p12 = pnand %p893_p11, %p1019_p5  ;;  %p899_p2 = por %p898_p1, %p897_p0 }
  0x1d   : > { %288 = vperm.xlu0 %857, %v284_v4   ;;  %p895_p13 = pneg %p894_p12 }
  0x1e   : > { %v301_v6 = vld.sshfl [vmem:[#allocation1] sm:$0xff pattern:$0x75316420]  ;;  %v302_v7 = vld.sshfl [vmem:[#allocation1 + $0x8] sm:$0xff pattern:$0x75316420]  ;;  %427 = vperm.xlu1 %858, %v423_v15  }
  0x1f   : > { %787 = vmatpush.msk.msra.mxu0 %vm312_vm0, %v301_v6  ;;  %790 = vmatpush.msk.msra.mxu1 %vm312_vm0, %v302_v7  ;;  %v303_v8 = vld.sshfl [vmem:[#allocation1 + $0x10] sm:$0xff pattern:$0x75316420]  ;;  %v304_v9 = vld.sshfl [vmem:[#allocation1 + $0x18] sm:$0xff pattern:$0x75316420]  ;;  %p900_p3 = pnand %p899_p2, %p895_p13 }
  0x20   : > { %793 = vmatpush.msk.msra.mxu2 %vm312_vm0, %v303_v8  ;;  %796 = vmatpush.msk.msra.mxu3 %vm312_vm0, %v304_v9 }
  0x21   : > { %788 = vmatmul.msk.f32.vlgmr.msra.gmra.mxu0 %vm305_vm1, %v280_v5  ;;  %791 = vmatmul.msk.f32.vlgmr.msra.gmra.mxu1 %vm305_vm1, %v280_v5 }
  0x22   : > { %794 = vmatmul.msk.f32.vlgmr.msra.gmra.mxu2 %vm305_vm1, %v280_v5  ;;  %797 = vmatmul.msk.f32.vlgmr.msra.gmra.mxu3 %vm305_vm1, %v280_v5 }
  0x29   : > { %789 = vmatmul.msk.f32.gmra.mxu0 %vm305_vm1, %v281_v10  ;;  %792 = vmatmul.msk.f32.gmra.mxu1 %vm305_vm1, %v281_v10 }
  0x2a   : > { %795 = vmatmul.msk.f32.gmra.mxu2 %vm305_vm1, %v281_v10  ;;  %798 = vmatmul.msk.f32.gmra.mxu3 %vm305_vm1, %v281_v10 }
  0x73   : > { %v547_v5 = vpop.permute.xlu2 %546 }
  0x87   : > { %v294_v11 = vpop.permute.xlu0 %293 }
  0x88   : > { %v433_v41 = vpop.permute.xlu1 %432 }
  0x8f   : > { %v289_v16 = vpop.permute.xlu0 %288 }
  0x90   : > { %v428_v45 = vpop.permute.xlu1 %427 }
  0x9e   : > { %v338_v13 = vpop.f32.mrf.mxu0  ;;  %v361_v14 = vpop.f32.mrf.mxu1 }
  0x9f   : > { %v339_v23 = vadd.f32 %v338_v13, %v289_v16  ;;  %v362_v24 = vadd.f32 %v361_v14, %v289_v16 }
  0xa1   : > { %v413_v27 = vmax.f32 %v339_v23, 0.0  ;;  %v414_v28 = vmax.f32 %v362_v24, 0.0 }
  0xa5   : > { %v384_v17 = vpop.f32.mrf.mxu2  ;;  %v407_v18 = vpop.f32.mrf.mxu3 }
  0xa6   : > { %v341_v19 = vpop.f32.mrf.mxu0  ;;  %v364_v20 = vpop.f32.mrf.mxu1  ;;  %v385_v30 = vadd.f32 %v384_v17, %v289_v16  ;;  %v408_v33 = vadd.f32 %v407_v18, %v289_v16 }
  0xa7   : > { %v342_v21 = vadd.f32 %v341_v19, %v294_v11  ;;  %v365_v22 = vadd.f32 %v364_v20, %v294_v11 }
  0xa8   : > { %v415_v38 = vmax.f32 %v385_v30, 0.0  ;;  %v416_v39 = vmax.f32 %v408_v33, 0.0 }
  0xa9   : > { %v417_v25 = vmax.f32 %v342_v21, 0.0  ;;  %v418_v26 = vmax.f32 %v365_v22, 0.0 }
  0xab   : > { %456 = vmatpush.msrb.mxu0 %v417_v25  ;;  %479 = vmatpush.msrb.mxu1 %v418_v26 }
  0xad   : > { %v387_v31 = vpop.f32.mrf.mxu2  ;;  %v410_v32 = vpop.f32.mrf.mxu3  ;;  %457 = vmatpush.msrb.mxu0 %v413_v27  ;;  %480 = vmatpush.msrb.mxu1 %v414_v28 }
  0xae   : > { %v388_v34 = vadd.f32 %v387_v31, %v294_v11  ;;  %v411_v35 = vadd.f32 %v410_v32, %v294_v11  ;;  %801 = vmatmul.msk.f32.vlgmr.msrb.gmra.mxu1 %vm435_vm2, %v421_v29  ;;  %799 = vmatmul.msk.f32.vlgmr.msrb.gmra.mxu0 %vm435_vm2, %v421_v29 }
  0xb0   : > { %v419_v36 = vmax.f32 %v388_v34, 0.0  ;;  %v420_v37 = vmax.f32 %v411_v35, 0.0 }
  0xb2   : > { %502 = vmatpush.msrb.mxu2 %v419_v36  ;;  %525 = vmatpush.msrb.mxu3 %v420_v37 }
  0xb4   : > { %503 = vmatpush.msrb.mxu2 %v415_v38  ;;  %526 = vmatpush.msrb.mxu3 %v416_v39 }
  0xb5   : > { %803 = vmatmul.msk.f32.vlgmr.msrb.gmra.mxu2 %vm435_vm2, %v421_v29  ;;  %805 = vmatmul.msk.f32.vlgmr.msrb.gmra.mxu3 %vm435_vm2, %v421_v29 }
  0xb6   : > { %802 = vmatmul.msk.f32.gmra.mxu1 %vm435_vm2, %v422_v40  ;;  %800 = vmatmul.msk.f32.gmra.mxu0 %vm435_vm2, %v422_v40 }
  0xbd   : > { %804 = vmatmul.msk.f32.gmra.mxu2 %vm435_vm2, %v422_v40  ;;  %806 = vmatmul.msk.f32.gmra.mxu3 %vm435_vm2, %v422_v40 }
 0x12b   : > { %v482_v43 = vpop.f32.mrf.mxu1  ;;  %v459_v44 = vpop.f32.mrf.mxu0 }
 0x12c   : > { %v460_v46 = vadd.f32 %v459_v44, %v428_v45  ;;  %v483_v47 = vadd.f32 %v482_v43, %v428_v45 }
 0x12e   : > { %v535_v54 = vmax.f32 %v483_v47, 0.0  ;;  %v534_v55 = vmax.f32 %v460_v46, 0.0 }
 0x133   : > { %v485_v48 = vpop.f32.mrf.mxu1  ;;  %v462_v49 = vpop.f32.mrf.mxu0 }
 0x134   : > { %v486_v50 = vadd.f32 %v485_v48, %v433_v41  ;;  %v463_v51 = vadd.f32 %v462_v49, %v433_v41 }
 0x136   : > { %v539_v52 = vmax.f32 %v486_v50, 0.0  ;;  %v538_v53 = vmax.f32 %v463_v51, 0.0 }
 0x138   : > { %v505_v56 = vpop.f32.mrf.mxu2  ;;  %v528_v57 = vpop.f32.mrf.mxu3  ;;  %586 = vmatpush.msra.mxu1 %v539_v52  ;;  %566 = vmatpush.msra.mxu0 %v538_v53 }
 0x139   : > { %v506_v61 = vadd.f32 %v505_v56, %v428_v45  ;;  %v529_v62 = vadd.f32 %v528_v57, %v428_v45 }
 0x13a   : > { %587 = vmatpush.msra.mxu1 %v535_v54  ;;  %567 = vmatpush.msra.mxu0 %v534_v55 }
 0x13b   : > { %808 = vmatmul.msk.f32.vlgmr.msra.gmra.mxu1 %vm435_vm2, %v542_v58  ;;  %807 = vmatmul.msk.f32.vlgmr.msra.gmra.mxu0 %vm435_vm2, %v542_v58  ;;  %v536_v3 = vmax.f32 %v506_v61, 0.0  ;;  %v537_v4 = vmax.f32 %v529_v62, 0.0 }
 0x140   : > { %v508_v59 = vpop.f32.mrf.mxu2  ;;  %v531_v60 = vpop.f32.mrf.mxu3 }
 0x141   : > { %v509_v63 = vadd.f32 %v508_v59, %v433_v41  ;;  %v532_v0 = vadd.f32 %v531_v60, %v433_v41 }
 0x143   : > { %v540_v1 = vmax.f32 %v509_v63, 0.0  ;;  %v541_v2 = vmax.f32 %v532_v0, 0.0 }
 0x145   : > { %606 = vmatpush.msra.mxu2 %v540_v1  ;;  %626 = vmatpush.msra.mxu3 %v541_v2 }
 0x147   : > { %607 = vmatpush.msra.mxu2 %v536_v3  ;;  %627 = vmatpush.msra.mxu3 %v537_v4 }
 0x148   : > { %809 = vmatmul.msk.f32.vlgmr.msra.gmra.mxu2 %vm435_vm2, %v542_v58  ;;  %810 = vmatmul.msk.f32.vlgmr.msra.gmra.mxu3 %vm435_vm2, %v542_v58 }
 0x1b8   : > { %v589_v6 = vpop.f32.mrf.mxu1  ;;  %v569_v7 = vpop.f32.mrf.mxu0 }
 0x1b9   : > { %v590_v8 = vadd.f32 %v589_v6, %v547_v5  ;;  %v570_v9 = vadd.f32 %v569_v7, %v547_v5 }
 0x1bb   : > { %v637_v10 = vand.u32 2147483647, %v590_v8  ;;  %v636_v11 = vand.u32 2147483647, %v570_v9  ;;  %v633_v38 = vmax.f32 %v590_v8, 0.0  ;;  %v632_v45 = vmax.f32 %v570_v9, 0.0 }
 0x1bd   : > { %v641_v12 = vsub.f32 0.0, %v637_v10  ;;  %v640_v13 = vsub.f32 0.0, %v636_v11 }
 0x1bf   : > { %v646_v14 = vmul.f32 1.442695, %v641_v12  ;;  %v644_v15 = vmul.f32 1.442695, %v640_v13 }
 0x1c1   : > { %860 = vpow2.f32 %v646_v14 }
 0x1c2   : > { %862 = vpow2.f32 %v644_v15 }
 0x1c7   : > { %v861_v16 = vpop.eup %860 }
 0x1c8   : > { %v863_v17 = vpop.eup %862  ;;  %v661_v18 = vadd.f32 1.0, %v861_v16  ;;  %v664_v19 = vmul.f32 -0.5, %v861_v16  ;;  %v667_v25 = vand.u32 2147483647, %v861_v16 }
 0x1c9   : > { %v652_v20 = vadd.f32 1.0, %v863_v17  ;;  %v655_v21 = vmul.f32 -0.5, %v863_v17  ;;  %v658_v29 = vand.u32 2147483647, %v863_v17 }
 0x1ca   : > { %864 = vlog2.f32 %v661_v18  ;;  %v665_v22 = vadd.f32 1.0, %v664_v19  ;;  %vm668_vm3 = vcmp.lt.f32.partialorder %v667_v25, 0.0004427343 }
 0x1cb   : > { %866 = vlog2.f32 %v652_v20  ;;  %v609_v23 = vpop.f32.mrf.mxu2  ;;  %v629_v24 = vpop.f32.mrf.mxu3  ;;  %v656_v26 = vadd.f32 1.0, %v655_v21  ;;  %vm659_vm4 = vcmp.lt.f32.partialorder %v658_v29, 0.0004427343 }
 0x1cc   : > { %v610_v27 = vadd.f32 %v609_v23, %v547_v5  ;;  %v630_v28 = vadd.f32 %v629_v24, %v547_v5  ;;  %v666_v32 = vmul.f32 %v861_v16, %v665_v22 }
 0x1cd   : > { %v657_v34 = vmul.f32 %v863_v17, %v656_v26 }
 0x1ce   : > { %v638_v30 = vand.u32 2147483647, %v610_v27  ;;  %v639_v31 = vand.u32 2147483647, %v630_v28  ;;  %v635_v2 = vmax.f32 %v630_v28, 0.0  ;;  %v634_v5 = vmax.f32 %v610_v27, 0.0 }
 0x1d0   : > { %v865_v33 = vpop.eup %864  ;;  %v642_v35 = vsub.f32 0.0, %v638_v30  ;;  %v643_v36 = vsub.f32 0.0, %v639_v31 }
 0x1d1   : > { %v867_v37 = vpop.eup %866  ;;  %v663_v39 = vmul.f32 0.6931472, %v865_v33 }
 0x1d2   : > { %v654_v40 = vmul.f32 0.6931472, %v867_v37  ;;  %v648_v41 = vmul.f32 1.442695, %v642_v35  ;;  %v650_v42 = vmul.f32 1.442695, %v643_v36 }
 0x1d3   : > { %v669_v43 = vsel %vm668_vm3, %v666_v32, %v663_v39 }
 0x1d4   : > { %v689_v44 = vadd.f32 %v669_v43, %v633_v38  ;;  %v660_v46 = vsel %vm659_vm4, %v657_v34, %v654_v40  ;;  %868 = vpow2.f32 %v648_v41 }
 0x1d5   : > { %870 = vpow2.f32 %v650_v42  ;;  %v688_v48 = vadd.f32 %v660_v46, %v632_v45 }
 0x1d6   : > { %v696_v47 = vrot.slane %v689_v44, 4 }
 0x1d8   : > { %v698_v49 = vsel %vm312_vm0, %v688_v48, %v696_v47 }
 0x1d9   : > { %702 = vst [vmem:[%s1091_s9] sm:$0xff] %v698_v49 }
 0x1da   : > { %v869_v50 = vpop.eup %868 }
 0x1db   : > { %v871_v51 = vpop.eup %870  ;;  %v670_v52 = vadd.f32 1.0, %v869_v50  ;;  %v673_v54 = vmul.f32 -0.5, %v869_v50  ;;  %v676_v58 = vand.u32 2147483647, %v869_v50 }
 0x1dc   : > { %v679_v53 = vadd.f32 1.0, %v871_v51  ;;  %v682_v55 = vmul.f32 -0.5, %v871_v51  ;;  %v685_v59 = vand.u32 2147483647, %v871_v51 }
 0x1dd   : > { %872 = vlog2.f32 %v670_v52  ;;  %v674_v56 = vadd.f32 1.0, %v673_v54  ;;  %vm677_vm5 = vcmp.lt.f32.partialorder %v676_v58, 0.0004427343 }
 0x1de   : > { %874 = vlog2.f32 %v679_v53  ;;  %v683_v57 = vadd.f32 1.0, %v682_v55  ;;  %vm686_vm6 = vcmp.lt.f32.partialorder %v685_v59, 0.0004427343 }
 0x1df   : > { %v675_v63 = vmul.f32 %v869_v50, %v674_v56 }
 0x1e0   : > { %v684_v1 = vmul.f32 %v871_v51, %v683_v57 }
 0x1e3   : > { %v873_v60 = vpop.eup %872 }
 0x1e4   : > { %v875_v61 = vpop.eup %874  ;;  %v672_v62 = vmul.f32 0.6931472, %v873_v60 }
 0x1e5   : > { %v681_v0 = vmul.f32 0.6931472, %v875_v61 }
 0x1e6   : > { %v678_v3 = vsel %vm677_vm5, %v675_v63, %v672_v62 }
 0x1e7   : > { %v687_v4 = vsel %vm686_vm6, %v684_v1, %v681_v0  ;;  %v690_v7 = vadd.f32 %v678_v3, %v634_v5 }
 0x1e8   : > { %v691_v6 = vadd.f32 %v687_v4, %v635_v2 }
 0x1ea   : > { %v697_v8 = vrot.slane %v691_v6, 4 }
 0x1ec   : > { %v699_v9 = vsel %vm312_vm0, %v690_v7, %v697_v8 }
 0x1ed   : > { %703 = vst [vmem:[%s1091_s9 + $0x8] sm:$0xff] %v699_v9 }
 0x1ee   : > { %903 = shalt.err (!%p900_p3)
}
 0x1ef   : > { %817 = dma.vmem_to_hbm [thread:$0]  (%p1019_p5), %s719_s28, 256, %s721_s17, %s705_s18  }
 0x1f0 PF: > { %p823_p4 = scmp.ge.s32.totalorder %s938_s27, 2  ;;  %s732_s29 = sand.u32 1, %s926_s24  }
 0x1f1   : > { %s733_s9 = scalar_lea.sflag [#allocation3], %s732_s29 }
 0x1f2   : > { %p820_p7 = pnand %p823_p4, %p1023_p6 }
 0x1f4   : > { %p821_p8 = pneg %p820_p7 }
 0x1f6   : > { %921 = dma.done.wait (%p821_p8), %s733_s9, 256  }
 0x1f7   : > { %923 = vsyncadd (%p821_p8), %s733_s9, 4294967040  ;;  %p17_p9 = scmp.ge.s32.totalorder %s1006_s30, 4   ;;  %s1140_s24 = smov %s930_s25 }
 0x1f8   : > { %s1141_s25 = smov %s934_s26  ;;  %s1142_s26 = smov %s1017_s10 }
 0x1f9   : > { %s1143_s27 = smov %s1006_s30  ;;  %19 = sbr.rel (!%p17_p9) target bundleno = 3 (0x3), region = 84 }
 0x1fe   :  { %739 = vsyncpa [#allocation3], 1 }
 0x1ff   :  { %741 = vsyncpa [#allocation3 + $0x1], 1 }

</bundles_post_ra>
